<compile_context>
chip_gen: v6e
topology: v6e:2x2x1
jax: 0.10.0
libtpu: 0.0.40
codegen_flags: <defaults>
</compile_context>

<pallas_src>
import jax
import jax.numpy as jnp
import numpy as np
from jax import lax
from jax.experimental import pallas as pl
from jax.experimental.pallas import tpu as pltpu


def _small_basic_block_kernel(x_ref, xtop_ref, xbot_ref,
                              w1_ref, b1_ref,
                              w2_ref, b2_ref,
                              w3_ref, b3_ref,
                              wo_ref, bo_ref,
                              o_ref):
    """One (batch, H-tile) grid step of the fused block."""
    i = pl.program_id(1)
    n_tiles = pl.num_programs(1)

    x_main = x_ref[0]                                   # (TH, W, Cin)  bf16
    TH, W, Cin = x_main.shape
    C4 = w1_ref.shape[1]
    Cout = wo_ref.shape[1]

    # Extended slab (TH + 2 rows): 1-row halo above/below from the clamped views.
    x_ext = jnp.concatenate([xtop_ref[0], x_main, xbot_ref[0]], axis=0)  # (TH+2, W, Cin)

    # ---- conv 1x1 (Cin -> C4) + ReLU over the extended rows -----------------
    y1 = jnp.dot(x_ext.reshape((TH + 2) * W, Cin), w1_ref[...],
                 preferred_element_type=jnp.float32) + b1_ref[...]
    y1 = jnp.maximum(y1, 0.0).reshape(TH + 2, W, C4)

    # Halo rows outside the image must act as the (3,1) conv's ZERO padding of
    # y1 (not relu(b1) of a clamped row) -> mask them out at image boundaries.
    row = lax.broadcasted_iota(jnp.int32, (TH + 2, 1, 1), 0)
    outside = jnp.logical_or(jnp.logical_and(i == 0, row == 0),
                             jnp.logical_and(i == n_tiles - 1, row == TH + 1))
    y1 = jnp.where(outside, 0.0, y1).astype(jnp.bfloat16)

    # ---- conv (3,1), pad (1,0): ONE wide-K matmul on [h-1 | h | h+1] --------
    cat_h = jnp.concatenate([y1[0:TH], y1[1:TH + 1], y1[2:TH + 2]], axis=-1)  # (TH, W, 3*C4)
    y2 = jnp.dot(cat_h.reshape(TH * W, 3 * C4), w2_ref[...],
                 preferred_element_type=jnp.float32) + b2_ref[...]
    y2 = jnp.maximum(y2, 0.0).astype(jnp.bfloat16).reshape(TH, W, C4)

    # ---- conv (1,3), pad (0,1): ONE wide-K matmul on [w-1 | w | w+1] --------
    zcol = jnp.zeros((TH, 1, C4), jnp.bfloat16)
    w_m1 = jnp.concatenate([zcol, y2[:, :W - 1]], axis=1)
    w_p1 = jnp.concatenate([y2[:, 1:], zcol], axis=1)
    cat_w = jnp.concatenate([w_m1, y2, w_p1], axis=-1)                        # (TH, W, 3*C4)
    y3 = jnp.dot(cat_w.reshape(TH * W, 3 * C4), w3_ref[...],
                 preferred_element_type=jnp.float32) + b3_ref[...]
    y3 = jnp.maximum(y3, 0.0).astype(jnp.bfloat16)                            # (TH*W, C4)

    # ---- fused output stage: [residual 1x1 ; shortcut 1x1] + add + ReLU -----
    cat_o = jnp.concatenate([y3, x_main.reshape(TH * W, Cin)], axis=-1)       # (TH*W, C4+Cin)
    out = jnp.dot(cat_o, wo_ref[...], preferred_element_type=jnp.float32) + bo_ref[...]
    out = jnp.maximum(out, 0.0)
    o_ref[0] = out.reshape(TH, W, Cout).astype(o_ref.dtype)


def _pick_tile_h(H, tile_h=None, target=8):
    """Largest divisor of H that is <= target (or the user-supplied tile)."""
    if tile_h is not None and H % tile_h == 0:
        return tile_h
    th = 1
    for d in range(1, H + 1):
        if H % d == 0 and d <= target:
            th = d
    return th


def small_basic_block_v2_nhwc(x_nhwc, params, *, tile_h=None):
    """Fused SmallBasicBlockV2 forward.  NHWC in -> NHWC out (f32)."""
    w1, b1, w2s, b2, w3s, b3, wo, bo = params
    x = x_nhwc.astype(jnp.bfloat16)                      # bf16 MXU operands
    N, H, W, Cin = x.shape
    Cout = wo.shape[1]
    TH = _pick_tile_h(H, tile_h)
    n_tiles = H // TH

    def const_spec(a):
        # Constant index map: the block is only DMA'd when the index changes,
        # so these small weight/bias tiles effectively stay resident in VMEM.
        nd = a.ndim
        return pl.BlockSpec(a.shape, lambda n, i, _nd=nd: (0,) * _nd)

    out_nhwc = pl.pallas_call(
        _small_basic_block_kernel,
        out_shape=jax.ShapeDtypeStruct((N, H, W, Cout), jnp.float32),
        grid=(N, n_tiles),
        in_specs=[
            # main TH-row slab of the image
            pl.BlockSpec((1, TH, W, Cin), lambda n, i: (n, i, 0, 0)),
            # 1-row halo above / below (index clamped at the image boundary;
            # the kernel zeroes the corresponding y1 rows there).
            pl.BlockSpec((1, 1, W, Cin),
                         lambda n, i: (n, jnp.maximum(i * TH - 1, 0), 0, 0)),
            pl.BlockSpec((1, 1, W, Cin),
                         lambda n, i: (n, jnp.minimum(i * TH + TH, H - 1), 0, 0)),
            const_spec(w1), const_spec(b1),
            const_spec(w2s), const_spec(b2),
            const_spec(w3s), const_spec(b3),
            const_spec(wo), const_spec(bo),
        ],
        out_specs=pl.BlockSpec((1, TH, W, Cout), lambda n, i: (n, i, 0, 0)),
        compiler_params=pltpu.CompilerParams(
            dimension_semantics=("parallel", "parallel"),
            vmem_limit_bytes=32 * 1024 * 1024),
    )(x, x, x, w1, b1, w2s, b2, w3s, b3, wo, bo)
    return out_nhwc


def small_basic_block_v2(x_nchw, params, *, tile_h=None):
    """NCHW in -> NCHW out (PyTorch convention).

    The two transposes exist only because the PyTorch interface is NCHW; in an
    NHWC end-to-end model call small_basic_block_v2_nhwc directly to avoid the
    extra HBM round trips.
    """
    x = jnp.transpose(x_nchw, (0, 2, 3, 1))
    out = small_basic_block_v2_nhwc(x, params, tile_h=tile_h)
    return jnp.transpose(out, (0, 3, 1, 2))


def init_raw_params(key, ch_in, ch_out):
    """Mirror init_weights: kaiming_normal(fan_out, relu) conv weights, zero biases."""
    c4 = ch_out // 4
    keys = jax.random.split(key, 5)

    def kaiming_oihw(k, cout, cin, kh, kw):
        fan_out = cout * kh * kw
        std = np.sqrt(2.0 / fan_out)
        return (std * jax.random.normal(k, (cout, cin, kh, kw))).astype(jnp.float32)

    w1 = kaiming_oihw(keys[0], c4, ch_in, 1, 1)
    w2 = kaiming_oihw(keys[1], c4, c4, 3, 1)
    w3 = kaiming_oihw(keys[2], c4, c4, 1, 3)
    w4 = kaiming_oihw(keys[3], ch_out, c4, 1, 1)
    ws = kaiming_oihw(keys[4], ch_out, ch_in, 1, 1)
    b1 = jnp.zeros((c4,), jnp.float32)
    b2 = jnp.zeros((c4,), jnp.float32)
    b3 = jnp.zeros((c4,), jnp.float32)
    b4 = jnp.zeros((ch_out,), jnp.float32)
    bs = jnp.zeros((ch_out,), jnp.float32)
    return (w1, b1, w2, b2, w3, b3, w4, b4, ws, bs)


def pack_params(raw):
    """PyTorch-layout (OIHW) weights -> fused / stacked bf16 kernel weights."""
    w1_o, b1, w2_o, b2, w3_o, b3, w4_o, b4, ws_o, bs = raw
    c4 = w1_o.shape[0]
    cout = w4_o.shape[0]

    w1 = jnp.transpose(w1_o[:, :, 0, 0], (1, 0)).astype(jnp.bfloat16)               # (Cin, C4)
    # (3,1) conv: tap kh pairs with input row h+kh-1; im2col lane order is [h-1|h|h+1]
    w2s = jnp.transpose(w2_o[:, :, :, 0], (2, 1, 0)).reshape(3 * c4, c4).astype(jnp.bfloat16)
    # (1,3) conv: tap kw pairs with input col w+kw-1; im2col lane order is [w-1|w|w+1]
    w3s = jnp.transpose(w3_o[:, :, 0, :], (2, 1, 0)).reshape(3 * c4, c4).astype(jnp.bfloat16)
    w4 = jnp.transpose(w4_o[:, :, 0, 0], (1, 0))                                     # (C4, Cout)
    ws = jnp.transpose(ws_o[:, :, 0, 0], (1, 0))                                     # (Cin, Cout)
    wo = jnp.concatenate([w4, ws], axis=0).astype(jnp.bfloat16)                      # (C4+Cin, Cout)

    b1k = b1.reshape(1, -1).astype(jnp.float32)
    b2k = b2.reshape(1, -1).astype(jnp.float32)
    b3k = b3.reshape(1, -1).astype(jnp.float32)
    bo = (b4 + bs).reshape(1, cout).astype(jnp.float32)
    return (w1, b1k, w2s, b2k, w3s, b3k, wo, bo)


def ref_forward_nhwc(x_nhwc, raw):
    """Independent f32 XLA reference (lax.conv) used only for the sanity check."""
    w1_o, b1, w2_o, b2, w3_o, b3, w4_o, b4, ws_o, bs = raw
    dn = ('NHWC', 'HWIO', 'NHWC')

    def conv(x, w_oihw, pad):
        w_hwio = jnp.transpose(w_oihw, (2, 3, 1, 0))
        return lax.conv_general_dilated(x, w_hwio, (1, 1), pad, dimension_numbers=dn)

    y = jax.nn.relu(conv(x_nhwc, w1_o, 'VALID') + b1)
    y = jax.nn.relu(conv(y, w2_o, ((1, 1), (0, 0))) + b2)
    y = jax.nn.relu(conv(y, w3_o, ((0, 0), (1, 1))) + b3)
    res = conv(y, w4_o, 'VALID') + b4
    sc = conv(x_nhwc, ws_o, 'VALID') + bs
    return jax.nn.relu(res + sc)


if __name__ == "__main__":
    key = jax.random.PRNGKey(0)
    kx, kp = jax.random.split(key)

    N, C_in, H, W = 2, 4, 16, 16
    C_out = 32

    x = jax.random.normal(kx, (N, C_in, H, W), jnp.float32)   # NCHW, like PyTorch
    raw = init_raw_params(kp, C_in, C_out)
    params = pack_params(raw)

    out = small_basic_block_v2(x, params, tile_h=8)           # 2 H-tiles/image -> 4 grid steps
    out = jax.block_until_ready(out)

    # Sanity check against an independent f32 XLA convolution reference.
    # (bf16 MXU operands -> relaxed tolerances, per review guidance.)
    x_nhwc = jnp.transpose(x, (0, 2, 3, 1))
    ref = jnp.transpose(ref_forward_nhwc(x_nhwc, raw), (0, 3, 1, 2))
    np.testing.assert_allclose(np.asarray(out), np.asarray(ref), rtol=5e-2, atol=5e-2)

    print("KERNEL_OK")
</pallas_src>

<mosaic_0001>
module attributes {stable_mosaic.version = 11 : i64} {
  func.func @_small_basic_block_kernel(%arg0: i32, %arg1: i32, %arg2: memref<1x8x16x4xbf16, #tpu.memory_space<vmem>>, %arg3: memref<1x1x16x4xbf16, #tpu.memory_space<vmem>>, %arg4: memref<1x1x16x4xbf16, #tpu.memory_space<vmem>>, %arg5: memref<4x8xbf16, #tpu.memory_space<vmem>>, %arg6: memref<1x8xf32, #tpu.memory_space<vmem>>, %arg7: memref<24x8xbf16, #tpu.memory_space<vmem>>, %arg8: memref<1x8xf32, #tpu.memory_space<vmem>>, %arg9: memref<24x8xbf16, #tpu.memory_space<vmem>>, %arg10: memref<1x8xf32, #tpu.memory_space<vmem>>, %arg11: memref<12x32xbf16, #tpu.memory_space<vmem>>, %arg12: memref<1x32xf32, #tpu.memory_space<vmem>>, %arg13: memref<1x8x16x32xf32, #tpu.memory_space<vmem>>) attributes {dimension_semantics = [#tpu.dimension_semantics<parallel>, #tpu.dimension_semantics<parallel>], iteration_bounds = array<i64: 2, 2>, scalar_prefetch = 0 : i64, scratch_operands = 0 : i64, tpu.core_type = #tpu.core_type<tc>, window_params = [{transform_indices = @transform_0, window_bounds = array<i64: 1, 8, 16, 4>}, {transform_indices = @transform_1, window_bounds = array<i64: 1, 1, 16, 4>}, {transform_indices = @transform_2, window_bounds = array<i64: 1, 1, 16, 4>}, {pipeline_mode = #tpu.pipeline_mode<synchronous>, transform_indices = @transform_3, window_bounds = array<i64: 4, 8>}, {pipeline_mode = #tpu.pipeline_mode<synchronous>, transform_indices = @transform_4, window_bounds = array<i64: 1, 8>}, {pipeline_mode = #tpu.pipeline_mode<synchronous>, transform_indices = @transform_5, window_bounds = array<i64: 24, 8>}, {pipeline_mode = #tpu.pipeline_mode<synchronous>, transform_indices = @transform_6, window_bounds = array<i64: 1, 8>}, {pipeline_mode = #tpu.pipeline_mode<synchronous>, transform_indices = @transform_7, window_bounds = array<i64: 24, 8>}, {pipeline_mode = #tpu.pipeline_mode<synchronous>, transform_indices = @transform_8, window_bounds = array<i64: 1, 8>}, {pipeline_mode = #tpu.pipeline_mode<synchronous>, transform_indices = @transform_9, window_bounds = array<i64: 12, 32>}, {pipeline_mode = #tpu.pipeline_mode<synchronous>, transform_indices = @transform_10, window_bounds = array<i64: 1, 32>}, {transform_indices = @transform_11, window_bounds = array<i64: 1, 8, 16, 32>}]} {
    %c0 = arith.constant 0 : index
    %c0_0 = arith.constant 0 : index
    %c0_1 = arith.constant 0 : index
    %c0_2 = arith.constant 0 : index
    %0 = vector.load %arg2[%c0, %c0_0, %c0_1, %c0_2] : memref<1x8x16x4xbf16, #tpu.memory_space<vmem>>, vector<1x8x16x4xbf16>
    %1 = vector.shape_cast %0 : vector<1x8x16x4xbf16> to vector<8x16x4xbf16>
    %c0_3 = arith.constant 0 : index
    %c0_4 = arith.constant 0 : index
    %c0_5 = arith.constant 0 : index
    %c0_6 = arith.constant 0 : index
    %2 = vector.load %arg3[%c0_3, %c0_4, %c0_5, %c0_6] : memref<1x1x16x4xbf16, #tpu.memory_space<vmem>>, vector<1x1x16x4xbf16>
    %3 = vector.shape_cast %2 : vector<1x1x16x4xbf16> to vector<1x16x4xbf16>
    %c0_7 = arith.constant 0 : index
    %c0_8 = arith.constant 0 : index
    %c0_9 = arith.constant 0 : index
    %c0_10 = arith.constant 0 : index
    %4 = vector.load %arg4[%c0_7, %c0_8, %c0_9, %c0_10] : memref<1x1x16x4xbf16, #tpu.memory_space<vmem>>, vector<1x1x16x4xbf16>
    %5 = vector.shape_cast %4 : vector<1x1x16x4xbf16> to vector<1x16x4xbf16>
    %6 = tpu.concatenate %3, %1, %5 in 0 : vector<1x16x4xbf16>, vector<8x16x4xbf16>, vector<1x16x4xbf16> -> vector<10x16x4xbf16>
    %7 = vector.shape_cast %6 : vector<10x16x4xbf16> to vector<160x4xbf16>
    %c0_11 = arith.constant 0 : index
    %c0_12 = arith.constant 0 : index
    %8 = vector.load %arg5[%c0_11, %c0_12] : memref<4x8xbf16, #tpu.memory_space<vmem>>, vector<4x8xbf16>
    %cst = arith.constant dense<0.000000e+00> : vector<160x8xf32>
    %9 = tpu.matmul %7, %8, %cst {dimension_numbers = #tpu.dot_dimension_numbers<[1], [0], [0], [1], [0, 0, 1, 1], [], []>} : vector<160x4xbf16>, vector<4x8xbf16>, vector<160x8xf32> -> vector<160x8xf32>
    %c0_13 = arith.constant 0 : index
    %c0_14 = arith.constant 0 : index
    %10 = vector.load %arg6[%c0_13, %c0_14] : memref<1x8xf32, #tpu.memory_space<vmem>>, vector<1x8xf32>
    %11 = vector.broadcast %10 : vector<1x8xf32> to vector<160x8xf32>
    %12 = arith.addf %9, %11 : vector<160x8xf32>
    %cst_15 = arith.constant 0.000000e+00 : f32
    %13 = vector.broadcast %cst_15 : f32 to vector<160x8xf32>
    %14 = arith.maximumf %12, %13 : vector<160x8xf32>
    %15 = vector.shape_cast %14 : vector<160x8xf32> to vector<10x16x8xf32>
    %16 = tpu.iota {dimensions = array<i32: 0>} : vector<10x1x1xi32>
    %c0_i32 = arith.constant 0 : i32
    %17 = arith.cmpi eq, %arg1, %c0_i32 : i32
    %c0_i32_16 = arith.constant 0 : i32
    %18 = vector.broadcast %c0_i32_16 : i32 to vector<10x1x1xi32>
    %19 = arith.cmpi eq, %16, %18 : vector<10x1x1xi32>
    %20 = vector.broadcast %17 : i1 to vector<10x1x1xi1>
    %21 = arith.andi %20, %19 : vector<10x1x1xi1>
    %c1_i32 = arith.constant 1 : i32
    %22 = arith.cmpi eq, %arg1, %c1_i32 : i32
    %c9_i32 = arith.constant 9 : i32
    %23 = vector.broadcast %c9_i32 : i32 to vector<10x1x1xi32>
    %24 = arith.cmpi eq, %16, %23 : vector<10x1x1xi32>
    %25 = vector.broadcast %22 : i1 to vector<10x1x1xi1>
    %26 = arith.andi %25, %24 : vector<10x1x1xi1>
    %27 = arith.ori %21, %26 : vector<10x1x1xi1>
    %cst_17 = arith.constant 0.000000e+00 : f32
    %28 = vector.shape_cast %27 : vector<10x1x1xi1> to vector<10x1x1xi1>
    %29 = vector.broadcast %28 : vector<10x1x1xi1> to vector<10x16x8xi1>
    %30 = vector.broadcast %cst_17 : f32 to vector<10x16x8xf32>
    %31 = arith.select %29, %30, %15 : vector<10x16x8xi1>, vector<10x16x8xf32>
    %32 = arith.truncf %31 : vector<10x16x8xf32> to vector<10x16x8xbf16>
    %33 = vector.extract_strided_slice %32 {offsets = [0, 0, 0], sizes = [8, 16, 8], strides = [1, 1, 1]} : vector<10x16x8xbf16> to vector<8x16x8xbf16>
    %34 = vector.extract_strided_slice %32 {offsets = [1, 0, 0], sizes = [8, 16, 8], strides = [1, 1, 1]} : vector<10x16x8xbf16> to vector<8x16x8xbf16>
    %35 = vector.extract_strided_slice %32 {offsets = [2, 0, 0], sizes = [8, 16, 8], strides = [1, 1, 1]} : vector<10x16x8xbf16> to vector<8x16x8xbf16>
    %36 = tpu.concatenate %33, %34, %35 in 2 : vector<8x16x8xbf16>, vector<8x16x8xbf16>, vector<8x16x8xbf16> -> vector<8x16x24xbf16>
    %37 = vector.shape_cast %36 : vector<8x16x24xbf16> to vector<128x24xbf16>
    %c0_18 = arith.constant 0 : index
    %c0_19 = arith.constant 0 : index
    %38 = vector.load %arg7[%c0_18, %c0_19] : memref<24x8xbf16, #tpu.memory_space<vmem>>, vector<24x8xbf16>
    %cst_20 = arith.constant dense<0.000000e+00> : vector<128x8xf32>
    %39 = tpu.matmul %37, %38, %cst_20 {dimension_numbers = #tpu.dot_dimension_numbers<[1], [0], [0], [1], [0, 0, 1, 1], [], []>} : vector<128x24xbf16>, vector<24x8xbf16>, vector<128x8xf32> -> vector<128x8xf32>
    %c0_21 = arith.constant 0 : index
    %c0_22 = arith.constant 0 : index
    %40 = vector.load %arg8[%c0_21, %c0_22] : memref<1x8xf32, #tpu.memory_space<vmem>>, vector<1x8xf32>
    %41 = vector.broadcast %40 : vector<1x8xf32> to vector<128x8xf32>
    %42 = arith.addf %39, %41 : vector<128x8xf32>
    %cst_23 = arith.constant 0.000000e+00 : f32
    %43 = vector.broadcast %cst_23 : f32 to vector<128x8xf32>
    %44 = arith.maximumf %42, %43 : vector<128x8xf32>
    %45 = arith.truncf %44 : vector<128x8xf32> to vector<128x8xbf16>
    %46 = vector.shape_cast %45 : vector<128x8xbf16> to vector<8x16x8xbf16>
    %cst_24 = arith.constant 0.000000e+00 : bf16
    %47 = vector.broadcast %cst_24 : bf16 to vector<8x1x8xbf16>
    %48 = vector.extract_strided_slice %46 {offsets = [0, 0, 0], sizes = [8, 15, 8], strides = [1, 1, 1]} : vector<8x16x8xbf16> to vector<8x15x8xbf16>
    %49 = tpu.concatenate %47, %48 in 1 : vector<8x1x8xbf16>, vector<8x15x8xbf16> -> vector<8x16x8xbf16>
    %50 = vector.extract_strided_slice %46 {offsets = [0, 1, 0], sizes = [8, 15, 8], strides = [1, 1, 1]} : vector<8x16x8xbf16> to vector<8x15x8xbf16>
    %51 = tpu.concatenate %50, %47 in 1 : vector<8x15x8xbf16>, vector<8x1x8xbf16> -> vector<8x16x8xbf16>
    %52 = tpu.concatenate %49, %46, %51 in 2 : vector<8x16x8xbf16>, vector<8x16x8xbf16>, vector<8x16x8xbf16> -> vector<8x16x24xbf16>
    %53 = vector.shape_cast %52 : vector<8x16x24xbf16> to vector<128x24xbf16>
    %c0_25 = arith.constant 0 : index
    %c0_26 = arith.constant 0 : index
    %54 = vector.load %arg9[%c0_25, %c0_26] : memref<24x8xbf16, #tpu.memory_space<vmem>>, vector<24x8xbf16>
    %cst_27 = arith.constant dense<0.000000e+00> : vector<128x8xf32>
    %55 = tpu.matmul %53, %54, %cst_27 {dimension_numbers = #tpu.dot_dimension_numbers<[1], [0], [0], [1], [0, 0, 1, 1], [], []>} : vector<128x24xbf16>, vector<24x8xbf16>, vector<128x8xf32> -> vector<128x8xf32>
    %c0_28 = arith.constant 0 : index
    %c0_29 = arith.constant 0 : index
    %56 = vector.load %arg10[%c0_28, %c0_29] : memref<1x8xf32, #tpu.memory_space<vmem>>, vector<1x8xf32>
    %57 = vector.broadcast %56 : vector<1x8xf32> to vector<128x8xf32>
    %58 = arith.addf %55, %57 : vector<128x8xf32>
    %cst_30 = arith.constant 0.000000e+00 : f32
    %59 = vector.broadcast %cst_30 : f32 to vector<128x8xf32>
    %60 = arith.maximumf %58, %59 : vector<128x8xf32>
    %61 = arith.truncf %60 : vector<128x8xf32> to vector<128x8xbf16>
    %62 = vector.shape_cast %1 : vector<8x16x4xbf16> to vector<128x4xbf16>
    %63 = tpu.concatenate %61, %62 in 1 : vector<128x8xbf16>, vector<128x4xbf16> -> vector<128x12xbf16>
    %c0_31 = arith.constant 0 : index
    %c0_32 = arith.constant 0 : index
    %64 = vector.load %arg11[%c0_31, %c0_32] : memref<12x32xbf16, #tpu.memory_space<vmem>>, vector<12x32xbf16>
    %cst_33 = arith.constant dense<0.000000e+00> : vector<128x32xf32>
    %65 = tpu.matmul %63, %64, %cst_33 {dimension_numbers = #tpu.dot_dimension_numbers<[1], [0], [0], [1], [0, 0, 1, 1], [], []>} : vector<128x12xbf16>, vector<12x32xbf16>, vector<128x32xf32> -> vector<128x32xf32>
    %c0_34 = arith.constant 0 : index
    %c0_35 = arith.constant 0 : index
    %66 = vector.load %arg12[%c0_34, %c0_35] : memref<1x32xf32, #tpu.memory_space<vmem>>, vector<1x32xf32>
    %67 = vector.broadcast %66 : vector<1x32xf32> to vector<128x32xf32>
    %68 = arith.addf %65, %67 : vector<128x32xf32>
    %cst_36 = arith.constant 0.000000e+00 : f32
    %69 = vector.broadcast %cst_36 : f32 to vector<128x32xf32>
    %70 = arith.maximumf %68, %69 : vector<128x32xf32>
    %71 = vector.shape_cast %70 : vector<128x32xf32> to vector<8x16x32xf32>
    %c0_37 = arith.constant 0 : index
    %c0_38 = arith.constant 0 : index
    %c0_39 = arith.constant 0 : index
    %c0_40 = arith.constant 0 : index
    %72 = vector.load %arg13[%c0_37, %c0_38, %c0_39, %c0_40] : memref<1x8x16x32xf32, #tpu.memory_space<vmem>>, vector<1x8x16x32xf32>
    %73 = vector.shape_cast %72 : vector<1x8x16x32xf32> to vector<8x16x32xf32>
    %74 = vector.shape_cast %71 : vector<8x16x32xf32> to vector<1x8x16x32xf32>
    tpu.vector_store %arg13[%c0_37, %c0_38, %c0_39, %c0_40], %74 {strides = array<i32>} : memref<1x8x16x32xf32, #tpu.memory_space<vmem>>, vector<1x8x16x32xf32>,
    return
  }
  func.func @transform_0(%arg0: i32, %arg1: i32) -> (i32, i32, i32, i32) {
    %c0_i32 = arith.constant 0 : i32
    %c0_i32_0 = arith.constant 0 : i32
    %c0_i32_1 = arith.constant 0 : i32
    return %arg0, %arg1, %c0_i32, %c0_i32_0 : i32, i32, i32, i32
  }
  func.func @transform_1(%arg0: i32, %arg1: i32) -> (i32, i32, i32, i32) {
    %c8_i32 = arith.constant 8 : i32
    %0 = arith.muli %arg1, %c8_i32 : i32
    %c1_i32 = arith.constant 1 : i32
    %1 = arith.subi %0, %c1_i32 : i32
    %c0_i32 = arith.constant 0 : i32
    %2 = arith.maxsi %1, %c0_i32 : i32
    %c0_i32_0 = arith.constant 0 : i32
    %c0_i32_1 = arith.constant 0 : i32
    %c0_i32_2 = arith.constant 0 : i32
    return %arg0, %2, %c0_i32_0, %c0_i32_1 : i32, i32, i32, i32
  }
  func.func @transform_2(%arg0: i32, %arg1: i32) -> (i32, i32, i32, i32) {
    %c8_i32 = arith.constant 8 : i32
    %0 = arith.muli %arg1, %c8_i32 : i32
    %c8_i32_0 = arith.constant 8 : i32
    %1 = arith.addi %0, %c8_i32_0 : i32
    %c15_i32 = arith.constant 15 : i32
    %2 = arith.minsi %1, %c15_i32 : i32
    %c0_i32 = arith.constant 0 : i32
    %c0_i32_1 = arith.constant 0 : i32
    %c0_i32_2 = arith.constant 0 : i32
    return %arg0, %2, %c0_i32, %c0_i32_1 : i32, i32, i32, i32
  }
  func.func @transform_3(%arg0: i32, %arg1: i32) -> (i32, i32) {
    %c0_i32 = arith.constant 0 : i32
    %c0_i32_0 = arith.constant 0 : i32
    %c0_i32_1 = arith.constant 0 : i32
    return %c0_i32, %c0_i32_0 : i32, i32
  }
  func.func @transform_4(%arg0: i32, %arg1: i32) -> (i32, i32) {
    %c0_i32 = arith.constant 0 : i32
    %c0_i32_0 = arith.constant 0 : i32
    %c0_i32_1 = arith.constant 0 : i32
    return %c0_i32, %c0_i32_0 : i32, i32
  }
  func.func @transform_5(%arg0: i32, %arg1: i32) -> (i32, i32) {
    %c0_i32 = arith.constant 0 : i32
    %c0_i32_0 = arith.constant 0 : i32
    %c0_i32_1 = arith.constant 0 : i32
    return %c0_i32, %c0_i32_0 : i32, i32
  }
  func.func @transform_6(%arg0: i32, %arg1: i32) -> (i32, i32) {
    %c0_i32 = arith.constant 0 : i32
    %c0_i32_0 = arith.constant 0 : i32
    %c0_i32_1 = arith.constant 0 : i32
    return %c0_i32, %c0_i32_0 : i32, i32
  }
  func.func @transform_7(%arg0: i32, %arg1: i32) -> (i32, i32) {
    %c0_i32 = arith.constant 0 : i32
    %c0_i32_0 = arith.constant 0 : i32
    %c0_i32_1 = arith.constant 0 : i32
    return %c0_i32, %c0_i32_0 : i32, i32
  }
  func.func @transform_8(%arg0: i32, %arg1: i32) -> (i32, i32) {
    %c0_i32 = arith.constant 0 : i32
    %c0_i32_0 = arith.constant 0 : i32
    %c0_i32_1 = arith.constant 0 : i32
    return %c0_i32, %c0_i32_0 : i32, i32
  }
  func.func @transform_9(%arg0: i32, %arg1: i32) -> (i32, i32) {
    %c0_i32 = arith.constant 0 : i32
    %c0_i32_0 = arith.constant 0 : i32
    %c0_i32_1 = arith.constant 0 : i32
    return %c0_i32, %c0_i32_0 : i32, i32
  }
  func.func @transform_10(%arg0: i32, %arg1: i32) -> (i32, i32) {
    %c0_i32 = arith.constant 0 : i32
    %c0_i32_0 = arith.constant 0 : i32
    %c0_i32_1 = arith.constant 0 : i32
    return %c0_i32, %c0_i32_0 : i32, i32
  }
  func.func @transform_11(%arg0: i32, %arg1: i32) -> (i32, i32, i32, i32) {
    %c0_i32 = arith.constant 0 : i32
    %c0_i32_0 = arith.constant 0 : i32
    %c0_i32_1 = arith.constant 0 : i32
    return %arg0, %arg1, %c0_i32, %c0_i32_0 : i32, i32, i32, i32
  }
}

</mosaic_0001>

<bundles_post_ra>
// kernel: tpu_custom_call.1
= control target key start
LH: loop header
LB: loop body
LE: loop exit
PB: predicated region body
PF: predicated region fallthrough
CT: control target
= control target key end

     0   :  { %s2785_s0 = inlined_call_operand.vmem [shape: bf16[2,16,16,4], index: 0, kind: input, shape index: {}]   ;;  %s2786_s1 = inlined_call_operand.vmem [shape: bf16[2,16,16,4], index: 1, kind: input, shape index: {}]   ;;  %s2787_s2 = inlined_call_operand.vmem [shape: bf16[2,16,16,4], index: 2, kind: input, shape index: {}]   ;;  %s2788_s3 = inlined_call_operand.vmem [shape: bf16[4,8], index: 3, kind: input, shape index: {}]   ;;  %s2789_s4 = inlined_call_operand.vmem [shape: f32[1,8], index: 4, kind: input, shape index: {}]   ;;  %s2790_s5 = inlined_call_operand.vmem [shape: bf16[24,8], index: 5, kind: input, shape index: {}]   ;;  %s2791_s6 = inlined_call_operand.vmem [shape: f32[1,8], index: 6, kind: input, shape index: {}]   ;;  %s2792_s7 = inlined_call_operand.vmem [shape: bf16[24,8], index: 7, kind: input, shape index: {}]   ;;  %s2793_s8 = inlined_call_operand.vmem [shape: f32[1,8], index: 8, kind: input, shape index: {}]   ;;  %s2794_s9 = inlined_call_operand.vmem [shape: bf16[12,32], index: 9, kind: input, shape index: {}]   ;;  %s2795_s10 = inlined_call_operand.vmem [shape: f32[1,32], index: 10, kind: input, shape index: {}]   ;;  %s2796_s11 = inlined_call_operand.hbm [shape: f32[2,16,16,32], index: 11, kind: output, shape index: {}]  }
   0x1   :  { %2806 = sst [smem:[#allocation14_spill]] %s2788_s3 }
   0x2   :  { %16 = vsyncpa [#allocation3], 0 }
   0x3   :  { %18 = vsyncpa [#allocation3 + $0x1], 0  ;;  %s2249_s17 = smov 0   ;;  %s2251_s18 = smov 0  }
   0x4   :  { %s2253_s19 = smov 0   ;;  %s2255_s20 = smov 0  }
   0x5   :  { %s2257_s21 = smov 0   ;;  %s2259_s22 = smov 0  }
   0x6   :  { %s2261_s23 = smov 0   ;;  %s2263_s24 = smov 0  }
   0x7 LB: > { %2807 = sst [smem:[#allocation5_spill]] %s2155_s17  ;;  %s1782_s25 = sadd.s32 4294967295, %s2183_s24   ;;  %s2183_s24 = sphi %s2263_s24, %s24_s24   ;;  %s2179_s23 = sphi %s2261_s23, %s2831_s23   ;;  %s2175_s22 = sphi %s2259_s22, %s2830_s22   ;;  %s2171_s21 = sphi %s2257_s21, %s2829_s21   ;;  %s2167_s20 = sphi %s2255_s20, %s2828_s20   ;;  %s2163_s19 = sphi %s2253_s19, %s2827_s19   ;;  %s2159_s18 = sphi %s2251_s18, %s2833_s18   ;;  %s2155_s17 = sphi %s2249_s17, %s2832_s17  }
   0x8   : > { %2808 = sst [smem:[#allocation6_spill]] %s2163_s19  ;;  %s1783_s26 = sadd.s32 4294967294, %s2183_s24  }
   0x9   : > { %2809 = sst [smem:[#allocation7_spill]] %s2175_s22  ;;  %s33_s27 = sadd.s32 1, %s2175_s22 }
   0xa   : > { %2810 = sst [smem:[#allocation8_spill]] %s2179_s23  ;;  %p34_p0 = scmp.ge.s32.totalorder %s33_s27, 2 }
   0xb   : > { %2811 = sst [smem:[#allocation9_spill]] %s2183_s24  ;;  %s36_s28 = sadd.s32 1, %s2179_s23 }
   0xc   : > { %p323_p1 = scmp.ne.s32.totalorder %s2163_s19, %s2159_s18  ;;  %p324_p2 = scmp.eq.s32.totalorder %s1782_s25, 3 }
   0xd   : > { %s2835_s27 = smov (%p34_p0, %s33_s27), 0  ;;  %s2837_s28 = smov (!%p34_p0, %s36_s28), %s2179_s23 }
   0xe   : > { %2812 = sst [smem:[#allocation10_spill]] %s2835_s27  ;;  %s309_s29 = ssub.s32 %s2175_s22, %s2835_s27 }
   0xf   : > { %p2300_p3 = por %p324_p2, %p323_p1  ;;  %p38_p4 = scmp.ge.s32.totalorder %s2837_s28, 2 }
  0x10   : > { %p329_p5 = scmp.ne.s32.totalorder %s2159_s18, %s2155_s17  ;;  %p330_p6 = scmp.eq.s32.totalorder %s1783_s26, 3 }
  0x11   : > { %p1792_p7 = scmp.ge.s32.totalorder %s2183_s24, 1  ;;  %s2839_s28 = smov (%p38_p4, %s2837_s28), 0 }
  0x12   : > { %2814 = sst [smem:[#allocation11_spill]] %s2839_s28  ;;  %p2309_p8 = por %p330_p6, %p329_p5 }
  0x13   : > { %p426_p9 = scmp.lt.s32.totalorder %s2183_s24, 5  ;;  %s308_s13 = ssub.s32 %s2179_s23, %s2839_s28 }
  0x14   : > { %s2815_s12 = scalar_select %p2309_p8, 1, 0 }
  0x15   : > { %s313_s14 = sadd.s32 1, %s2163_s19  ;;  %s310_s15 = sor.u32 %s309_s29, %s308_s13 }
  0x16   : > { %2816 = sst [smem:[#allocation12_spill]] %s2815_s12  ;;  %p427_p10 = pnand %p1792_p7, %p426_p9 }
  0x17   : > { %p311_p11 = scmp.eq.s32.totalorder %s310_s15, 0  ;;  %s2818_s3 = sld [smem:[#allocation14_spill]] (!%p427_p10) }
  0x18   : > { %430 = sbr.rel (%p427_p10) target bundleno = 1153 (0x481), region = 64  ;;  %s1794_s26 = sshll.u32 (!%p427_p10), %s2167_s20, 3 }
  0x19   : > { %s2318_s16 = scalar_select %p311_p11, %s2163_s19, %s313_s14  }
  0x1a   : > { %p498_p12 = scmp.lt.s32.totalorder (!%p427_p10), %s2171_s21, 1  ;;  %p500_p13 = scmp.lt.s32.totalorder (!%p427_p10), %s1794_s26, 15 }
  0x1b   : > { %2817 = sst [smem:[#allocation13_spill]] %s2318_s16  ;;  %s1799_s28 = sadd.s32 (!%p427_p10), 4294967295, %s1794_s26 }
  0x1c   : > { %p510_p0 = scmp.gt.s32.totalorder (!%p427_p10), %s1799_s28, 0  ;;  %p1800_p1 = scmp.lt.s32.totalorder (!%p427_p10), %s1799_s28, 15 }
  0x1d   : > { %v564_v0 = vld [vmem:[%s2818_s3] sm:$0x3]  ;;  %vm653_vm0 = vcmask 1041408   ;;  %s499_s29 = scalar_select %p498_p12, %s2171_s21, 1  ;;  %vm622_vm1 = vcmask 31744   ;;  %vm951_vm2 = vcmask 1043456  }
  0x1e   : > { %1998 = vmatprep.subr.msk.bf16.mxu0 %vm653_vm0, %v564_v0  ;;  %v655_v1 = vsel %vm653_vm0, %v564_v0, 0  ;;  %s501_s13 = scalar_select %p500_p13, %s1794_s26, 15  ;;  %v2086_v12 = vld [vmem:[%s2790_s5 + $0x8] ss:$0 sps:$4 sm:$0xff]   ;;  %v2376_v14 = vld [vmem:[%s2789_s4] ss:$0 sm:$0xff] }
  0x1f   : > { %1919 = vmatpush3.bf16.msra.mxu0 %v655_v1  ;;  %s1796_s14 = sshll.u32 %s499_s29, 5  ;;  %s526_s27 = sadd.s32 8, %s1794_s26  ;;  %1999 = vmatprep.subr.msk.bf16.mxu1 %vm951_vm2, %v2086_v12  ;;  %v953_v15 = vsel %vm951_vm2, %v2086_v12, 0  ;;  %v2087_v27 = vld [vmem:[%s2790_s5] sm:$0xff]   ;;  %vm873_vm5 = vcmask 64512   ;;  %vm898_vm6 = vcmask 130048  }
  0x20   : > { %s1795_s15 = sshll.u32 %s501_s13, 1  ;;  %p527_p2 = scmp.lt.s32.totalorder %s526_s27, 15  ;;  %1941 = vmatpush3.bf16.msra.mxu1 %v953_v15  ;;  %vm934_vm7 = vcmask 195584   ;;  %vm1175_vm8 = vcmask 1047552   ;;  %vm1176_vm9 = vsmask.f32 7424 }
  0x21   : > { %s504_s23 = sadd.s32 %s1796_s14, %s1795_s15  ;;  %s2841_s28 = smov (!%p510_p0, %s1799_s28), 0  ;;  %1942 = vmatprep.subr.bf16.mxu1 %v2087_v27  ;;  %vm2499_vm10 = vmand %vm1175_vm8, %vm1176_vm9  ;;  %vm1504_vm11 = vcmask 1045504   ;;  %vm1140_vm12 = vcmask 1040384   ;;  %vm1141_vm13 = vsmask.f32 256  ;;  %vm1487_vm15 = vcmask 97280  }
  0x22   : > { %s1797_s25 = sshll.u32 %s504_s23, 2  ;;  %s2843_s27 = smov (!%p527_p2, %s526_s27), 15  ;;  %vm2575_vm14 = vmand %vm1140_vm12, %vm1141_vm13  ;;  %vm1621_vm0 = vcmask 261120  }
  0x23   : > { %s506_s16 = scalar_lea.vmem %s2785_s0, %s1797_s25  ;;  %s2845_s28 = smov (!%p1800_p1, %s2841_s28), 15 }
  0x24   : > { %s2847_s27 = smov (!%p527_p2, %s2843_s27), 15  ;;  %s1805_s19 = sshll.u32 %s2845_s28, 1  ;;  %v2329_v2 = vld [vmem:[%s506_s16] sm:$0xff]   ;;  %v2334_v3 = vld [vmem:[%s506_s16 + $0x8] sm:$0xff]   ;;  %v2344_v5 = vld [vmem:[%s506_s16 + $0x10] sm:$0xff]   ;;  %1943 = vmatpush3.bf16.msra.mxu1 %v2087_v27 }
  0x25   : > { %s518_s12 = sadd.s32 %s1805_s19, %s1796_s14  ;;  %s1812_s17 = sshll.u32 %s2847_s27, 1  ;;  %v2346_v6 = vld [vmem:[%s506_s16 + $0x18] sm:$0xff]   ;;  %v2352_v7 = vld [vmem:[%s506_s16 + $0x20] sm:$0xff]   ;;  %v2354_v8 = vld [vmem:[%s506_s16 + $0x28] sm:$0xff]  }
  0x26   : > { %s1807_s29 = sshll.u32 %s518_s12, 2  ;;  %s535_s24 = sadd.s32 %s1812_s17, %s1796_s14  ;;  %v2360_v9 = vld [vmem:[%s506_s16 + $0x30] sm:$0xff]   ;;  %v2362_v10 = vld [vmem:[%s506_s16 + $0x38] sm:$0xff]  }
  0x27   : > { %s520_s23 = scalar_lea.vmem %s2786_s1, %s1807_s29  ;;  %s1814_s15 = sshll.u32 %s535_s24, 2 }
  0x28   : > { %s537_s25 = scalar_lea.vmem %s2787_s2, %s1814_s15  ;;  %v2076_v4 = vld [vmem:[%s520_s23] sm:$0xff]   ;;  %p790_p4 = scmp.eq.s32.totalorder %s2167_s20, 0 }
  0x29   : > { %1920 = vmatprep.mubr.msk.bf16.mxu0 %vm622_vm1, %v2076_v4  ;;  %v2085_v11 = vld [vmem:[%s537_s25] sm:$0xff]   ;;  %s2185_s27 = smov 8   ;;  %s2186_s29 = smov 16  }
  0x2a   : > { %1921 = vmatmul.mubr.msk.bf16.vlgmr.msra.gmra.mxu0 %vm622_vm1, %v2329_v2  ;;  %s791_s12 = scalar_select %p790_p4, 1, 0 }
  0x2b   : > { %1924 = vmatprep.mubr.msk.bf16.mxu0 %vm622_vm1, %v2334_v3  ;;  %p794_p5 = scmp.eq.s32.totalorder %s2167_s20, 1  ;;  %s1877_s26 = sshll.u32 %s2167_s20, 4 }
  0x2c   : > { %v792_v20 = vstv %s791_s12  ;;  %s494_s12 = sand.u32 1, %s2159_s18   ;;  %s1871_s23 = sshll.u32 %s2171_s21, 5 }
  0x2d   : > { %vm793_vm3 = vcmp.eq.s32.totalorder %v792_v20, 1  ;;  %s795_s13 = scalar_select %p794_p5, 1, 0 }
  0x2e   : > { %s1652_s15 = sadd.s32 %s1877_s26, %s1871_s23  ;;  %s2733_s17 = scalar_lea.sflag [#allocation3], %s494_s12 }
  0x2f   : > { %s1872_s20 = sshll.u32 %s1652_s15, 7  ;;  %s2187_s24 = smov [#allocation2]  }
  0x30   : > { %s2723_s25 = scalar_lea.hbm %s2796_s11, %s1872_s20  ;;  %s2095_s28 = sshll.u32 %s2187_s24, 4  ;;  %s2096_s28 = int_to_ptr.vmem [resolvable:$false] %s2095_s28 }
  0x31   : > { %s2097_s16 = scalar_lea.vmem %s2096_s28, 4096 }
  0x32   : > { %1925 = vmatmul.mubr.msk.bf16.gmra.mxu0 %vm622_vm1, %v2344_v5 }
  0x33   : > { %1928 = vmatprep.mubr.msk.bf16.mxu0 %vm622_vm1, %v2346_v6 }
  0x3a   : > { %1929 = vmatmul.mubr.msk.bf16.gmra.mxu0 %vm622_vm1, %v2352_v7 }
  0x3b   : > { %1932 = vmatprep.mubr.msk.bf16.mxu0 %vm622_vm1, %v2354_v8 }
  0x42   : > { %1933 = vmatmul.mubr.msk.bf16.gmra.mxu0 %vm622_vm1, %v2360_v9 }
  0x43   : > { %1936 = vmatprep.mubr.msk.bf16.mxu0 %vm622_vm1, %v2362_v10 }
  0x4a   : > { %1937 = vmatmul.mubr.msk.bf16.gmra.mxu0 %vm622_vm1, %v2085_v11 }
  0xea   : > { %v1922_v13 = vpop.f32.mrf.mxu0 }
  0xeb   : > { %v700_v17 = vadd.f32 %v1922_v13, %v2376_v14 }
  0xec   : > { %v691_v16 = vpop.f32.mrf.mxu0 }
  0xed   : > { %v692_v18 = vadd.f32 %v2376_v14, %v691_v16  ;;  %v772_v23 = vmax.f32 %v700_v17, 0.0 }
  0xee   : > { %v1923_v19 = vpop.f32.mrf.mxu0 }
  0xef   : > { %v703_v21 = vadd.f32 %v1923_v19, %v2376_v14  ;;  %v770_v24 = vmax.f32 %v692_v18, 0.0 }
  0xf0   : > { %v694_v22 = vpop.f32.mrf.mxu0 }
  0xf1   : > { %v773_v25 = vmax.f32 %v703_v21, 0.0  ;;  %v695_v26 = vadd.f32 %v2376_v14, %v694_v22  ;;  %v2389_v32 = vsel %vm793_vm3, 0.0, %v770_v24 }
  0xf2   : > { %v1926_v28 = vpop.f32.mrf.mxu0 }
  0xf3   : > { %v771_v29 = vmax.f32 %v695_v26, 0.0  ;;  %v2387_v30 = vpack.c.bf16 %v773_v25, %v772_v23  ;;  %v716_v41 = vadd.f32 %v1926_v28, %v2376_v14  ;;  %v796_v28 = vstv %s795_s13 }
  0xf4   : > { %v707_v31 = vpop.f32.mrf.mxu0  ;;  %vm797_vm4 = vcmp.eq.s32.totalorder %v796_v28, 1 }
  0xf5   : > { %v2391_v33 = vsel %vm793_vm3, 0.0, %v771_v29  ;;  %840 = vrot.lane.b32.xlu0 %v2387_v30, %s2185_s27  ;;  %v708_v36 = vadd.f32 %v2376_v14, %v707_v31  ;;  %v776_v48 = vmax.f32 %v716_v41, 0.0 }
  0xf6   : > { %v822_v34 = vpack.c.bf16 %v2391_v33, %v2389_v32  ;;  %v1927_v35 = vpop.f32.mrf.mxu0 }
  0xf7   : > { %v719_v38 = vadd.f32 %v1927_v35, %v2376_v14  ;;  %v774_v42 = vmax.f32 %v708_v36, 0.0 }
  0xf8   : > { %v710_v37 = vpop.f32.mrf.mxu0 }
  0xf9   : > { %v711_v39 = vadd.f32 %v2376_v14, %v710_v37  ;;  %v777_v45 = vmax.f32 %v719_v38, 0.0 }
  0xfa   : > { %v1930_v40 = vpop.f32.mrf.mxu0 }
  0xfb   : > { %v775_v43 = vmax.f32 %v711_v39, 0.0  ;;  %v2408_v51 = vpack.c.bf16 %v777_v45, %v776_v48  ;;  %v732_v55 = vadd.f32 %v1930_v40, %v2376_v14 }
  0xfc   : > { %v723_v44 = vpop.f32.mrf.mxu0 }
  0xfd   : > { %v2401_v46 = vpack.c.bf16 %v775_v43, %v774_v42  ;;  %v724_v49 = vadd.f32 %v2376_v14, %v723_v44  ;;  %v780_v62 = vmax.f32 %v732_v55, 0.0 }
  0xfe   : > { %v1931_v47 = vpop.f32.mrf.mxu0 }
  0xff   : > { %857 = vrot.lane.b32.xlu1 %v2401_v46, %s2186_s29  ;;  %842 = vrot.lane.b32.xlu0 %v2401_v46, %s2185_s27  ;;  %v735_v52 = vadd.f32 %v1931_v47, %v2376_v14  ;;  %v778_v56 = vmax.f32 %v724_v49, 0.0 }
 0x100   : > { %v726_v50 = vpop.f32.mrf.mxu0 }
 0x101   : > { %v727_v53 = vadd.f32 %v2376_v14, %v726_v50  ;;  %v781_v59 = vmax.f32 %v735_v52, 0.0 }
 0x102   : > { %v1934_v54 = vpop.f32.mrf.mxu0 }
 0x103   : > { %v779_v57 = vmax.f32 %v727_v53, 0.0  ;;  %859 = vrot.lane.b32.xlu1 %v2408_v51, %s2186_s29  ;;  %844 = vrot.lane.b32.xlu0 %v2408_v51, %s2185_s27  ;;  %v2424_v1 = vpack.c.bf16 %v781_v59, %v780_v62  ;;  %v748_v13 = vadd.f32 %v1934_v54, %v2376_v14 }
 0x104   : > { %v739_v58 = vpop.f32.mrf.mxu0 }
 0x105   : > { %v2417_v60 = vpack.c.bf16 %v779_v57, %v778_v56  ;;  %v740_v63 = vadd.f32 %v2376_v14, %v739_v58  ;;  %v784_v21 = vmax.f32 %v748_v13, 0.0  ;;  %v2089_v13 = vld [vmem:[%s2792_s7] sm:$0xff]  }
 0x106   : > { %v1935_v61 = vpop.f32.mrf.mxu0 }
 0x107   : > { %846 = vrot.lane.b32.xlu1 %v2417_v60, %s2185_s27  ;;  %861 = vrot.lane.b32.xlu0 %v2417_v60, %s2186_s29  ;;  %v751_v4 = vadd.f32 %v1935_v61, %v2376_v14  ;;  %v782_v15 = vmax.f32 %v740_v63, 0.0 }
 0x108   : > { %v742_v0 = vpop.f32.mrf.mxu0 }
 0x109   : > { %v743_v11 = vadd.f32 %v2376_v14, %v742_v0  ;;  %v785_v18 = vmax.f32 %v751_v4, 0.0 }
 0x10a   : > { %v1938_v12 = vpop.f32.mrf.mxu0 }
 0x10b   : > { %v783_v16 = vmax.f32 %v743_v11, 0.0  ;;  %863 = vrot.lane.b32.xlu1 %v2424_v1, %s2186_s29  ;;  %848 = vrot.lane.b32.xlu0 %v2424_v1, %s2185_s27  ;;  %v764_v24 = vadd.f32 %v1938_v12, %v2376_v14  ;;  %v829_v26 = vpack.c.bf16 %v785_v18, %v784_v21 }
 0x10c   : > { %v755_v17 = vpop.f32.mrf.mxu0 }
 0x10d   : > { %v828_v19 = vpack.c.bf16 %v783_v16, %v782_v15  ;;  %v756_v22 = vadd.f32 %v2376_v14, %v755_v17  ;;  %v788_v36 = vmax.f32 %v764_v24, 0.0  ;;  %v2488_v17 = vld [vmem:[%s2791_s6] ss:$0 sm:$0xff] }
 0x10e   : > { %v1939_v20 = vpop.f32.mrf.mxu0 }
 0x10f   : > { %v767_v23 = vadd.f32 %v1939_v20, %v2376_v14  ;;  %850 = vrot.lane.b32.xlu1 %v828_v19, %s2185_s27  ;;  %865 = vrot.lane.b32.xlu0 %v828_v19, %s2186_s29  ;;  %v786_v31 = vmax.f32 %v756_v22, 0.0  ;;  %v820_v39 = vsel %vm797_vm4, 0.0, %v788_v36 }
 0x110   : > { %v758_v25 = vpop.f32.mrf.mxu0 }
 0x111   : > { %v759_v27 = vadd.f32 %v2376_v14, %v758_v25  ;;  %v789_v29 = vmax.f32 %v767_v23, 0.0 }
 0x113   : > { %v787_v35 = vmax.f32 %v759_v27, 0.0  ;;  %867 = vrot.lane.b32.xlu1 %v829_v26, %s2186_s29  ;;  %852 = vrot.lane.b32.xlu0 %v829_v26, %s2185_s27  ;;  %v821_v38 = vsel %vm797_vm4, 0.0, %v789_v29 }
 0x114   : > { %v831_v40 = vpack.c.bf16 %v821_v38, %v820_v39 }
 0x115   : > { %v830_v37 = vpack.c.bf16 %v787_v35, %v786_v31 }
 0x117   : > { %854 = vrot.lane.b32.xlu1 %v830_v37, %s2185_s27  ;;  %869 = vrot.lane.b32.xlu0 %v830_v37, %s2186_s29 }
 0x11b   : > { %871 = vrot.lane.b32.xlu1 %v831_v40, %s2186_s29 }
 0x167   : > { %v841_v14 = vpop.permute.xlu0 %840 }
 0x168   : > { %v876_v41 = vsel %vm873_vm5, %v822_v34, %v841_v14 }
 0x171   : > { %v858_v42 = vpop.permute.xlu1 %857  ;;  %v843_v43 = vpop.permute.xlu0 %842 }
 0x172   : > { %v900_v44 = vsel %vm898_vm6, %v876_v41, %v858_v42  ;;  %v879_v45 = vsel %vm873_vm5, %v2387_v30, %v843_v43 }
 0x173   : > { %1944 = vmatprep.mubr.msk.bf16.mxu1 %vm934_vm7, %v900_v44 }
 0x175   : > { %v860_v47 = vpop.permute.xlu1 %859  ;;  %v845_v48 = vpop.permute.xlu0 %844 }
 0x176   : > { %v902_v49 = vsel %vm898_vm6, %v879_v45, %v860_v47  ;;  %v882_v32 = vsel %vm873_vm5, %v2401_v46, %v845_v48 }
 0x177   : > { %1945 = vmatmul.mubr.msk.bf16.vlgmr.msra.gmra.mxu1 %vm934_vm7, %v902_v49 }
 0x179   : > { %v847_v33 = vpop.permute.xlu1 %846  ;;  %v862_v34 = vpop.permute.xlu0 %861 }
 0x17a   : > { %v904_v50 = vsel %vm898_vm6, %v882_v32, %v862_v34  ;;  %v885_v52 = vsel %vm873_vm5, %v2408_v51, %v847_v33 }
 0x17b   : > { %1948 = vmatprep.mubr.msk.bf16.mxu1 %vm934_vm7, %v904_v50 }
 0x17d   : > { %v864_v53 = vpop.permute.xlu1 %863  ;;  %v849_v30 = vpop.permute.xlu0 %848 }
 0x17e   : > { %v906_v54 = vsel %vm898_vm6, %v885_v52, %v864_v53  ;;  %v888_v55 = vsel %vm873_vm5, %v2417_v60, %v849_v30 }
 0x17f   : > { %1949 = vmatmul.mubr.msk.bf16.gmra.mxu1 %vm934_vm7, %v906_v54 }
 0x181   : > { %v851_v56 = vpop.permute.xlu1 %850  ;;  %v866_v46 = vpop.permute.xlu0 %865 }
 0x182   : > { %v908_v57 = vsel %vm898_vm6, %v888_v55, %v866_v46  ;;  %v891_v58 = vsel %vm873_vm5, %v2424_v1, %v851_v56  ;;  %v2088_v1 = vld [vmem:[%s2792_s7 + $0x8] ss:$0 sps:$4 sm:$0xff]  }
 0x183   : > { %1952 = vmatprep.mubr.msk.bf16.mxu1 %vm934_vm7, %v908_v57  ;;  %2000 = vmatprep.subr.msk.bf16.mxu1 %vm951_vm2, %v2088_v1  ;;  %v1310_v15 = vsel %vm951_vm2, %v2088_v1, 0 }
 0x184   : > { %1961 = vmatpush3.bf16.msra.mxu1 %v1310_v15 }
 0x185   : > { %v868_v59 = vpop.permute.xlu1 %867  ;;  %v853_v51 = vpop.permute.xlu0 %852  ;;  %1962 = vmatprep.subr.bf16.mxu1 %v2089_v13 }
 0x186   : > { %v910_v61 = vsel %vm898_vm6, %v891_v58, %v868_v59  ;;  %v894_v62 = vsel %vm873_vm5, %v828_v19, %v853_v51 }
 0x187   : > { %1953 = vmatmul.mubr.msk.bf16.gmra.mxu1 %vm934_vm7, %v910_v61 }
 0x188   : > { %1963 = vmatpush3.bf16.msra.mxu1 %v2089_v13 }
 0x189   : > { %v855_v63 = vpop.permute.xlu1 %854  ;;  %v870_v0 = vpop.permute.xlu0 %869 }
 0x18a   : > { %v912_v60 = vsel %vm898_vm6, %v894_v62, %v870_v0  ;;  %v897_v4 = vsel %vm873_vm5, %v829_v26, %v855_v63 }
 0x18b   : > { %1956 = vmatprep.mubr.msk.bf16.mxu1 %vm934_vm7, %v912_v60 }
 0x18d   : > { %v872_v11 = vpop.permute.xlu1 %871 }
 0x18e   : > { %v914_v12 = vsel %vm898_vm6, %v897_v4, %v872_v11 }
 0x18f   : > { %1957 = vmatmul.mubr.msk.bf16.gmra.mxu1 %vm934_vm7, %v914_v12 }
 0x237   : > { %v1946_v16 = vpop.f32.mrf.mxu1 }
 0x238   : > { %v998_v19 = vadd.f32 %v1946_v16, %v2488_v17 }
 0x239   : > { %v989_v18 = vpop.f32.mrf.mxu1 }
 0x23a   : > { %v990_v21 = vadd.f32 %v2488_v17, %v989_v18  ;;  %v1054_v24 = vmax.f32 %v998_v19, 0.0 }
 0x23b   : > { %v1947_v20 = vpop.f32.mrf.mxu1 }
 0x23c   : > { %v1001_v22 = vadd.f32 %v1947_v20, %v2488_v17  ;;  %v1052_v28 = vmax.f32 %v990_v21, 0.0 }
 0x23d   : > { %v992_v23 = vpop.f32.mrf.mxu1 }
 0x23e   : > { %v1055_v25 = vmax.f32 %v1001_v22, 0.0  ;;  %v993_v26 = vadd.f32 %v2488_v17, %v992_v23 }
 0x23f   : > { %v1950_v27 = vpop.f32.mrf.mxu1 }
 0x240   : > { %v1069_v29 = vpack.c.bf16 %v1055_v25, %v1054_v24  ;;  %v1053_v31 = vmax.f32 %v993_v26, 0.0  ;;  %v1014_v35 = vadd.f32 %v1950_v27, %v2488_v17 }
 0x241   : > { %v1005_v36 = vpop.f32.mrf.mxu1 }
 0x242   : > { %v1087_v37 = vshll.u32 %v1069_v29, 16  ;;  %v1068_v38 = vpack.c.bf16 %v1053_v31, %v1052_v28  ;;  %1196 = vrot.lane.b32.xlu1 %v1069_v29, %s2185_s27  ;;  %v1084_v40 = vshrl.u32 %v1069_v29, 16  ;;  %v1006_v41 = vadd.f32 %v2488_v17, %v1005_v36 }
 0x243   : > { %v1951_v39 = vpop.f32.mrf.mxu1  ;;  %v1058_v44 = vmax.f32 %v1014_v35, 0.0 }
 0x244   : > { %v1080_v14 = vshll.u32 %v1068_v38, 16  ;;  %v1017_v42 = vadd.f32 %v1951_v39, %v2488_v17  ;;  %1194 = vrot.lane.b32.xlu0 %v1068_v38, %s2185_s27  ;;  %v1153_v43 = vrot.slane %v1087_v37, 1  ;;  %v1086_v48 = vrot.slane %v1084_v40, 7 }
 0x245   : > { %v1008_v45 = vpop.f32.mrf.mxu1  ;;  %v1077_v49 = vshrl.u32 %v1068_v38, 16  ;;  %v1056_v54 = vmax.f32 %v1006_v41, 0.0 }
 0x246   : > { %v1059_v32 = vmax.f32 %v1017_v42, 0.0  ;;  %v1009_v33 = vadd.f32 %v2488_v17, %v1008_v45  ;;  %v1154_v34 = vor.u32 %v1153_v43, %v1084_v40  ;;  %v1151_v50 = vrot.slane %v1080_v14, 1 }
 0x247   : > { %v1954_v52 = vpop.f32.mrf.mxu1  ;;  %v1079_v53 = vrot.slane %v1077_v49, 7  ;;  %v2504_v30 = vor.u32 %v1087_v37, %v1086_v48 }
 0x248   : > { %v1071_v55 = vpack.c.bf16 %v1059_v32, %v1058_v44  ;;  %v1057_v56 = vmax.f32 %v1009_v33, 0.0  ;;  %v1179_v46 = vsel %vm2499_vm10, %v1154_v34, 0  ;;  %v1030_v57 = vadd.f32 %v1954_v52, %v2488_v17 }
 0x249   : > { %1220 = vrot.lane.b32.xlu1 %v1179_v46, %s2186_s29  ;;  %v1021_v58 = vpop.f32.mrf.mxu1  ;;  %v1152_v59 = vor.u32 %v1151_v50, %v1077_v49  ;;  %v2510_v51 = vor.u32 %v1080_v14, %v1079_v53 }
 0x24a   : > { %v1101_v61 = vshll.u32 %v1071_v55, 16  ;;  %v1070_v62 = vpack.c.bf16 %v1057_v56, %v1056_v54  ;;  %v1098_v60 = vshrl.u32 %v1071_v55, 16  ;;  %v1022_v11 = vadd.f32 %v2488_v17, %v1021_v58 }
 0x24b   : > { %v1955_v63 = vpop.f32.mrf.mxu1  ;;  %v1178_v0 = vsel %vm2499_vm10, %v1152_v59, 0  ;;  %v1062_v13 = vmax.f32 %v1030_v57, 0.0 }
 0x24c   : > { %v1094_v4 = vshll.u32 %v1070_v62, 16  ;;  %v1033_v12 = vadd.f32 %v1955_v63, %v2488_v17  ;;  %1218 = vrot.lane.b32.xlu0 %v1178_v0, %s2186_s29  ;;  %v1157_v1 = vrot.slane %v1101_v61, 1  ;;  %v1100_v16 = vrot.slane %v1098_v60, 7 }
 0x24d   : > { %1200 = vrot.lane.b32.xlu1 %v1071_v55, %s2185_s27  ;;  %v1024_v15 = vpop.f32.mrf.mxu1  ;;  %v1091_v18 = vshrl.u32 %v1070_v62, 16  ;;  %v1060_v26 = vmax.f32 %v1022_v11, 0.0 }
 0x24e   : > { %v1063_v19 = vmax.f32 %v1033_v12, 0.0  ;;  %v1025_v20 = vadd.f32 %v2488_v17, %v1024_v15  ;;  %v1158_v21 = vor.u32 %v1157_v1, %v1098_v60  ;;  %v1155_v22 = vrot.slane %v1094_v4, 1 }
 0x24f   : > { %v1958_v23 = vpop.f32.mrf.mxu1  ;;  %v1093_v24 = vrot.slane %v1091_v18, 7  ;;  %v2519_v25 = vor.u32 %v1101_v61, %v1100_v16 }
 0x250   : > { %v1073_v27 = vpack.c.bf16 %v1063_v19, %v1062_v13  ;;  %v1061_v28 = vmax.f32 %v1025_v20, 0.0  ;;  %1198 = vrot.lane.b32.xlu0 %v1070_v62, %s2185_s27  ;;  %v1181_v29 = vsel %vm2499_vm10, %v1158_v21, 0  ;;  %v1046_v31 = vadd.f32 %v1958_v23, %v2488_v17 }
 0x251   : > { %1224 = vrot.lane.b32.xlu1 %v1181_v29, %s2186_s29  ;;  %v1037_v35 = vpop.f32.mrf.mxu1  ;;  %v1156_v36 = vor.u32 %v1155_v22, %v1091_v18  ;;  %v2526_v37 = vor.u32 %v1094_v4, %v1093_v24  ;;  %v1146_v29 = vsel %vm2575_vm14, 0, %v2519_v25 }
 0x252   : > { %v1115_v38 = vshll.u32 %v1073_v27, 16  ;;  %v1072_v39 = vpack.c.bf16 %v1061_v28, %v1060_v26  ;;  %v1038_v40 = vadd.f32 %v2488_v17, %v1037_v35  ;;  %v1112_v42 = vshrl.u32 %v1073_v27, 16 }
 0x253   : > { %v1959_v14 = vpop.f32.mrf.mxu1  ;;  %v1180_v41 = vsel %vm2499_vm10, %v1156_v36, 0  ;;  %v1066_v48 = vmax.f32 %v1046_v31, 0.0 }
 0x254   : > { %v1108_v43 = vshll.u32 %v1072_v39, 16  ;;  %v1049_v44 = vadd.f32 %v1959_v14, %v2488_v17  ;;  %1222 = vrot.lane.b32.xlu0 %v1180_v41, %s2186_s29  ;;  %v1161_v45 = vrot.slane %v1115_v38, 1  ;;  %v1114_v32 = vrot.slane %v1112_v42, 7 }
 0x255   : > { %1204 = vrot.lane.b32.xlu1 %v1073_v27, %s2185_s27  ;;  %v1040_v49 = vpop.f32.mrf.mxu1  ;;  %v1105_v33 = vshrl.u32 %v1072_v39, 16  ;;  %v1064_v54 = vmax.f32 %v1038_v40, 0.0 }
 0x256   : > { %v1067_v34 = vmax.f32 %v1049_v44, 0.0  ;;  %v1041_v50 = vadd.f32 %v2488_v17, %v1040_v49  ;;  %v1162_v52 = vor.u32 %v1161_v45, %v1112_v42  ;;  %v1159_v53 = vrot.slane %v1108_v43, 1  ;;  %v2090_v17 = vld [vmem:[%s2794_s9] sm:$0x3f]  }
 0x257   : > { %v1107_v55 = vrot.slane %v1105_v33, 7  ;;  %v2535_v56 = vor.u32 %v1115_v38, %v1114_v32  ;;  %2001 = vmatprep.subr.msk.bf16.mxu0 %vm1504_vm11, %v2090_v17  ;;  %v1506_v4 = vsel %vm1504_vm11, %v2090_v17, 0 }
 0x258   : > { %v1075_v46 = vpack.c.bf16 %v1067_v34, %v1066_v48  ;;  %v1065_v57 = vmax.f32 %v1041_v50, 0.0  ;;  %1202 = vrot.lane.b32.xlu0 %v1072_v39, %s2185_s27  ;;  %v1183_v58 = vsel %vm2499_vm10, %v1162_v52, 0  ;;  %v1160_v59 = vor.u32 %v1159_v53, %v1105_v33  ;;  %1981 = vmatpush3.bf16.msra.mxu0 %v1506_v4 }
 0x259   : > { %1228 = vrot.lane.b32.xlu1 %v1183_v58, %s2186_s29  ;;  %v2541_v61 = vor.u32 %v1108_v43, %v1107_v55  ;;  %v1148_v41 = vsel %vm2575_vm14, 0, %v2535_v56 }
 0x25a   : > { %v1129_v62 = vshll.u32 %v1075_v46, 16  ;;  %v1074_v63 = vpack.c.bf16 %v1065_v57, %v1064_v54  ;;  %v1182_v0 = vsel %vm2499_vm10, %v1160_v59, 0  ;;  %v1126_v60 = vshrl.u32 %v1075_v46, 16  ;;  %v2629_v57 = vld [vmem:[%s2793_s8] ss:$0 sm:$0xff] }
 0x25b   : > { %v1147_v25 = vsel %vm2575_vm14, 0, %v2541_v61 }
 0x25c   : > { %v1122_v11 = vshll.u32 %v1074_v63, 16  ;;  %1226 = vrot.lane.b32.xlu0 %v1182_v0, %s2186_s29  ;;  %v1165_v12 = vrot.slane %v1129_v62, 1  ;;  %v1128_v1 = vrot.slane %v1126_v60, 7  ;;  %v1119_v13 = vshrl.u32 %v1074_v63, 16 }
 0x25d   : > { %1208 = vrot.lane.b32.xlu1 %v1075_v46, %s2185_s27 }
 0x25e   : > { %v1166_v15 = vor.u32 %v1165_v12, %v1126_v60  ;;  %v1121_v16 = vrot.slane %v1119_v13, 7  ;;  %v1163_v18 = vrot.slane %v1122_v11, 1  ;;  %v2550_v19 = vor.u32 %v1129_v62, %v1128_v1 }
 0x260   : > { %1206 = vrot.lane.b32.xlu0 %v1074_v63, %s2185_s27  ;;  %v1185_v20 = vsel %vm2499_vm10, %v1166_v15, 0  ;;  %v1164_v21 = vor.u32 %v1163_v18, %v1119_v13  ;;  %v1124_v22 = vor.u32 %v1122_v11, %v1121_v16  ;;  %v1150_v50 = vsel %vm2575_vm14, 0, %v2550_v19 }
 0x261   : > { %1232 = vrot.lane.b32.xlu1 %v1185_v20, %s2186_s29 }
 0x262   : > { %v1184_v23 = vsel %vm2499_vm10, %v1164_v21, 0  ;;  %v1149_v33 = vsel %vm2575_vm14, 0, %v1124_v22 }
 0x264   : > { %1230 = vrot.lane.b32.xlu0 %v1184_v23, %s2186_s29  ;;  %s1793_s29 = sshll.u32 %s494_s12, 7 }
 0x265   : > { %1435 = vrot.lane.b32.xlu1 %v2334_v3, %s2185_s27  ;;  %s2673_s13 = scalar_lea.vmem [#allocation2], %s1793_s29 }
 0x266   : > { %s1655_s21 = sshll.u32 %s2673_s13, 4  ;;  %s2727_s21 = int_to_ptr.vmem [resolvable:$true] %s1655_s21 }
 0x267   : > { %s2091_s19 = scalar_lea.vmem %s2727_s21, 2048  ;;  %p2098_p10 = scmp.lt.s32.totalorder %s2727_s21, %s2096_s28 }
 0x268   : > { %1433 = vrot.lane.b32.xlu0 %v2329_v2, %s2185_s27  ;;  %p2092_p6 = scmp.ne.s32.totalorder %s2727_s21, %s2091_s19  ;;  %p2099_p11 = scmp.lt.s32.totalorder %s2097_s16, %s2091_s19 }
 0x269   : > { %1439 = vrot.lane.b32.xlu1 %v2346_v6, %s2185_s27 }
 0x26a   : > { %p2093_p7 = pnand %p2092_p6, %p2300_p3  ;;  %p2100_p12 = por %p2099_p11, %p2098_p10 }
 0x26c   : > { %1437 = vrot.lane.b32.xlu0 %v2344_v5, %s2185_s27  ;;  %p2094_p9 = pneg %p2093_p7 }
 0x26d   : > { %1443 = vrot.lane.b32.xlu1 %v2354_v8, %s2185_s27  ;;  %v1143_v8 = vsel %vm2575_vm14, 0, %v2510_v51 }
 0x26e   : > { %p2101_p13 = pnand %p2100_p12, %p2094_p9 }
 0x270   : > { %1441 = vrot.lane.b32.xlu0 %v2352_v7, %s2185_s27  ;;  %v1144_v7 = vsel %vm2575_vm14, 0, %v2504_v30  ;;  %v1145_v30 = vsel %vm2575_vm14, 0, %v2526_v37 }
 0x271   : > { %1447 = vrot.lane.b32.xlu1 %v2362_v10, %s2185_s27 }
 0x274   : > { %1445 = vrot.lane.b32.xlu0 %v2360_v9, %s2185_s27 }
 0x2b4   : > { %v1197_v3 = vpop.permute.xlu1 %1196 }
 0x2b5   : > { %v1239_v47 = vsel %vm873_vm5, %v1144_v7, %v1197_v3 }
 0x2b6   : > { %v1195_v2 = vpop.permute.xlu0 %1194 }
 0x2b7   : > { %v1236_v10 = vsel %vm873_vm5, %v1143_v8, %v1195_v2 }
 0x2bb   : > { %v1221_v5 = vpop.permute.xlu1 %1220 }
 0x2bc   : > { %v1261_v27 = vsel %vm898_vm6, %v1239_v47, %v1221_v5 }
 0x2be   : > { %v1219_v9 = vpop.permute.xlu0 %1218 }
 0x2bf   : > { %v1259_v24 = vsel %vm898_vm6, %v1236_v10, %v1219_v9  ;;  %v1201_v26 = vpop.permute.xlu1 %1200 }
 0x2c0   : > { %1964 = vmatprep.mubr.msk.bf16.mxu1 %vm934_vm7, %v1259_v24  ;;  %v1245_v36 = vsel %vm873_vm5, %v1146_v29, %v1201_v26 }
 0x2c1   : > { %1965 = vmatmul.mubr.msk.bf16.vlgmr.msra.gmra.mxu1 %vm934_vm7, %v1261_v27 }
 0x2c2   : > { %v1199_v28 = vpop.permute.xlu0 %1198 }
 0x2c3   : > { %v1225_v51 = vpop.permute.xlu1 %1224  ;;  %v1242_v31 = vsel %vm873_vm5, %v1145_v30, %v1199_v28 }
 0x2c4   : > { %v1265_v40 = vsel %vm898_vm6, %v1245_v36, %v1225_v51 }
 0x2c6   : > { %v1223_v35 = vpop.permute.xlu0 %1222 }
 0x2c7   : > { %v1263_v38 = vsel %vm898_vm6, %v1242_v31, %v1223_v35  ;;  %v1205_v39 = vpop.permute.xlu1 %1204 }
 0x2c8   : > { %1968 = vmatprep.mubr.msk.bf16.mxu1 %vm934_vm7, %v1263_v38  ;;  %v1251_v44 = vsel %vm873_vm5, %v1148_v41, %v1205_v39 }
 0x2c9   : > { %1969 = vmatmul.mubr.msk.bf16.gmra.mxu1 %vm934_vm7, %v1265_v40 }
 0x2ca   : > { %v1203_v14 = vpop.permute.xlu0 %1202 }
 0x2cb   : > { %v1229_v37 = vpop.permute.xlu1 %1228  ;;  %v1248_v42 = vsel %vm873_vm5, %v1147_v25, %v1203_v14 }
 0x2cc   : > { %v1269_v49 = vsel %vm898_vm6, %v1251_v44, %v1229_v37 }
 0x2ce   : > { %v1227_v43 = vpop.permute.xlu0 %1226 }
 0x2cf   : > { %v1267_v45 = vsel %vm898_vm6, %v1248_v42, %v1227_v43  ;;  %v1209_v48 = vpop.permute.xlu1 %1208 }
 0x2d0   : > { %1972 = vmatprep.mubr.msk.bf16.mxu1 %vm934_vm7, %v1267_v45  ;;  %v1257_v54 = vsel %vm873_vm5, %v1150_v50, %v1209_v48 }
 0x2d1   : > { %1973 = vmatmul.mubr.msk.bf16.gmra.mxu1 %vm934_vm7, %v1269_v49 }
 0x2d2   : > { %v1207_v32 = vpop.permute.xlu0 %1206 }
 0x2d3   : > { %v1233_v34 = vpop.permute.xlu1 %1232  ;;  %v1254_v52 = vsel %vm873_vm5, %v1149_v33, %v1207_v32 }
 0x2d4   : > { %v1273_v56 = vsel %vm898_vm6, %v1257_v54, %v1233_v34 }
 0x2d6   : > { %v1231_v53 = vpop.permute.xlu0 %1230 }
 0x2d7   : > { %v1271_v55 = vsel %vm898_vm6, %v1254_v52, %v1231_v53  ;;  %v1436_v19 = vpop.permute.xlu1 %1435 }
 0x2d8   : > { %1976 = vmatprep.mubr.msk.bf16.mxu1 %vm934_vm7, %v1271_v55 }
 0x2d9   : > { %1977 = vmatmul.mubr.msk.bf16.gmra.mxu1 %vm934_vm7, %v1273_v56 }
 0x2da   : > { %v1434_v16 = vpop.permute.xlu0 %1433 }
 0x2db   : > { %v1440_v51 = vpop.permute.xlu1 %1439 }
 0x2de   : > { %v1438_v27 = vpop.permute.xlu0 %1437 }
 0x2df   : > { %v1444_v49 = vpop.permute.xlu1 %1443 }
 0x2e2   : > { %v1442_v45 = vpop.permute.xlu0 %1441 }
 0x381   : > { %v1966_v46 = vpop.f32.mrf.mxu1 }
 0x382   : > { %v1355_v59 = vadd.f32 %v1966_v46, %v2629_v57 }
 0x383   : > { %v1346_v58 = vpop.f32.mrf.mxu1 }
 0x384   : > { %v1347_v17 = vadd.f32 %v2629_v57, %v1346_v58  ;;  %v1411_v4 = vmax.f32 %v1355_v59, 0.0 }
 0x385   : > { %v1967_v61 = vpop.f32.mrf.mxu1 }
 0x386   : > { %v1358_v62 = vadd.f32 %v1967_v61, %v2629_v57  ;;  %v1409_v12 = vmax.f32 %v1347_v17, 0.0  ;;  %v1446_v17 = vpop.permute.xlu0 %1445 }
 0x387   : > { %v1349_v63 = vpop.f32.mrf.mxu1 }
 0x388   : > { %v1412_v0 = vmax.f32 %v1358_v62, 0.0  ;;  %v1350_v60 = vadd.f32 %v2629_v57, %v1349_v63  ;;  %v1448_v63 = vpop.permute.xlu1 %1447 }
 0x389   : > { %v1970_v11 = vpop.f32.mrf.mxu1 }
 0x38a   : > { %v1410_v1 = vmax.f32 %v1350_v60, 0.0  ;;  %v1426_v13 = vpack.c.bf16 %v1412_v0, %v1411_v4  ;;  %v1371_v20 = vadd.f32 %v1970_v11, %v2629_v57 }
 0x38b   : > { %v1362_v15 = vpop.f32.mrf.mxu1 }
 0x38c   : > { %v1425_v18 = vpack.c.bf16 %v1410_v1, %v1409_v12  ;;  %v1363_v22 = vadd.f32 %v2629_v57, %v1362_v15  ;;  %v1454_v2 = vsel %vm873_vm5, %v1426_v13, %v1436_v19  ;;  %v1415_v7 = vmax.f32 %v1371_v20, 0.0 }
 0x38d   : > { %v1971_v21 = vpop.f32.mrf.mxu1 }
 0x38e   : > { %v1451_v23 = vsel %vm873_vm5, %v1425_v18, %v1434_v16  ;;  %v1374_v3 = vadd.f32 %v1971_v21, %v2629_v57  ;;  %v1413_v9 = vmax.f32 %v1363_v22, 0.0 }
 0x38f   : > { %v1365_v6 = vpop.f32.mrf.mxu1  ;;  %1982 = vmatprep.mubr.msk.bf16.mxu0 %vm1487_vm15, %v1451_v23 }
 0x390   : > { %v1416_v5 = vmax.f32 %v1374_v3, 0.0  ;;  %v1366_v8 = vadd.f32 %v2629_v57, %v1365_v6  ;;  %1983 = vmatmul.mubr.msk.bf16.vlgmr.msra.gmra.mxu0 %vm1487_vm15, %v1454_v2 }
 0x391   : > { %v1974_v10 = vpop.f32.mrf.mxu1 }
 0x392   : > { %v1414_v47 = vmax.f32 %v1366_v8, 0.0  ;;  %v1428_v24 = vpack.c.bf16 %v1416_v5, %v1415_v7  ;;  %v1387_v30 = vadd.f32 %v1974_v10, %v2629_v57 }
 0x393   : > { %v1378_v26 = vpop.f32.mrf.mxu1 }
 0x394   : > { %v1427_v28 = vpack.c.bf16 %v1414_v47, %v1413_v9  ;;  %v1379_v31 = vadd.f32 %v2629_v57, %v1378_v26  ;;  %v1460_v38 = vsel %vm873_vm5, %v1428_v24, %v1440_v51  ;;  %v1419_v37 = vmax.f32 %v1387_v30, 0.0 }
 0x395   : > { %v1975_v29 = vpop.f32.mrf.mxu1 }
 0x396   : > { %v1457_v35 = vsel %vm873_vm5, %v1427_v28, %v1438_v27  ;;  %v1390_v36 = vadd.f32 %v1975_v29, %v2629_v57  ;;  %v1417_v41 = vmax.f32 %v1379_v31, 0.0 }
 0x397   : > { %v1381_v39 = vpop.f32.mrf.mxu1  ;;  %1986 = vmatprep.mubr.msk.bf16.mxu0 %vm1487_vm15, %v1457_v35 }
 0x398   : > { %v1420_v40 = vmax.f32 %v1390_v36, 0.0  ;;  %v1382_v14 = vadd.f32 %v2629_v57, %v1381_v39  ;;  %1987 = vmatmul.mubr.msk.bf16.gmra.mxu0 %vm1487_vm15, %v1460_v38 }
 0x399   : > { %v1978_v25 = vpop.f32.mrf.mxu1 }
 0x39a   : > { %v1418_v42 = vmax.f32 %v1382_v14, 0.0  ;;  %v1430_v43 = vpack.c.bf16 %v1420_v40, %v1419_v37  ;;  %v1403_v32 = vadd.f32 %v1978_v25, %v2629_v57 }
 0x39b   : > { %v1394_v44 = vpop.f32.mrf.mxu1 }
 0x39c   : > { %v1429_v48 = vpack.c.bf16 %v1418_v42, %v1417_v41  ;;  %v1395_v34 = vadd.f32 %v2629_v57, %v1394_v44  ;;  %v1466_v53 = vsel %vm873_vm5, %v1430_v43, %v1444_v49  ;;  %v1423_v46 = vmax.f32 %v1403_v32, 0.0 }
 0x39d   : > { %v1979_v33 = vpop.f32.mrf.mxu1 }
 0x39e   : > { %v1463_v50 = vsel %vm873_vm5, %v1429_v48, %v1442_v45  ;;  %v1406_v52 = vadd.f32 %v1979_v33, %v2629_v57  ;;  %v1421_v58 = vmax.f32 %v1395_v34, 0.0 }
 0x39f   : > { %v1397_v54 = vpop.f32.mrf.mxu1  ;;  %1990 = vmatprep.mubr.msk.bf16.mxu0 %vm1487_vm15, %v1463_v50 }
 0x3a0   : > { %v1424_v55 = vmax.f32 %v1406_v52, 0.0  ;;  %v1398_v56 = vadd.f32 %v2629_v57, %v1397_v54  ;;  %1991 = vmatmul.mubr.msk.bf16.gmra.mxu0 %vm1487_vm15, %v1466_v53  ;;  %v2667_v57 = vld [vmem:[%s2795_s10] ss:$0 sm:$0xff] }
 0x3a2   : > { %v1422_v59 = vmax.f32 %v1398_v56, 0.0  ;;  %v1432_v61 = vpack.c.bf16 %v1424_v55, %v1423_v46 }
 0x3a4   : > { %v1431_v62 = vpack.c.bf16 %v1422_v59, %v1421_v58  ;;  %v1472_v60 = vsel %vm873_vm5, %v1432_v61, %v1448_v63 }
 0x3a6   : > { %v1469_v0 = vsel %vm873_vm5, %v1431_v62, %v1446_v17 }
 0x3a7   : > { %1994 = vmatprep.mubr.msk.bf16.mxu0 %vm1487_vm15, %v1469_v0 }
 0x3a8   : > { %1995 = vmatmul.mubr.msk.bf16.gmra.mxu0 %vm1487_vm15, %v1472_v60 }
 0x450   : > { %v1984_v4 = vpop.f32.mrf.mxu0 }
 0x451   : > { %v1551_v11 = vadd.f32 %v1984_v4, %v2667_v57 }
 0x452   : > { %v1542_v12 = vpop.f32.mrf.mxu0 }
 0x453   : > { %v1607_v1 = vmax.f32 %v1551_v11, 0.0  ;;  %v1543_v13 = vadd.f32 %v2667_v57, %v1542_v12 }
 0x454   : > { %v1985_v15 = vpop.f32.mrf.mxu0 }
 0x455   : > { %1624 = vst.msk [vmem:[%s2673_s13 + $0x10] sm:$0xff] %vm1621_vm0, %v1607_v1  ;;  %v1605_v16 = vmax.f32 %v1543_v13, 0.0  ;;  %v1554_v18 = vadd.f32 %v1985_v15, %v2667_v57 }
 0x456   : > { %v1545_v19 = vpop.f32.mrf.mxu0 }
 0x457   : > { %1622 = vst.msk [vmem:[%s2673_s13] sm:$0xff] %vm1621_vm0, %v1605_v16  ;;  %v1608_v20 = vmax.f32 %v1554_v18, 0.0  ;;  %v1546_v21 = vadd.f32 %v2667_v57, %v1545_v19 }
 0x458   : > { %v1988_v22 = vpop.f32.mrf.mxu0 }
 0x459   : > { %1625 = vst.msk [vmem:[%s2673_s13 + $0x18] sm:$0xff] %vm1621_vm0, %v1608_v20  ;;  %v1606_v23 = vmax.f32 %v1546_v21, 0.0  ;;  %v1567_v3 = vadd.f32 %v1988_v22, %v2667_v57 }
 0x45a   : > { %v1558_v2 = vpop.f32.mrf.mxu0 }
 0x45b   : > { %1623 = vst.msk [vmem:[%s2673_s13 + $0x8] sm:$0xff] %vm1621_vm0, %v1606_v23  ;;  %v1611_v6 = vmax.f32 %v1567_v3, 0.0  ;;  %v1559_v5 = vadd.f32 %v2667_v57, %v1558_v2 }
 0x45c   : > { %v1989_v8 = vpop.f32.mrf.mxu0 }
 0x45d   : > { %1628 = vst.msk [vmem:[%s2673_s13 + $0x30] sm:$0xff] %vm1621_vm0, %v1611_v6  ;;  %v1609_v7 = vmax.f32 %v1559_v5, 0.0  ;;  %v1570_v10 = vadd.f32 %v1989_v8, %v2667_v57 }
 0x45e   : > { %v1561_v9 = vpop.f32.mrf.mxu0 }
 0x45f   : > { %1626 = vst.msk [vmem:[%s2673_s13 + $0x20] sm:$0xff] %vm1621_vm0, %v1609_v7  ;;  %v1612_v47 = vmax.f32 %v1570_v10, 0.0  ;;  %v1562_v24 = vadd.f32 %v2667_v57, %v1561_v9 }
 0x460   : > { %v1992_v26 = vpop.f32.mrf.mxu0 }
 0x461   : > { %1629 = vst.msk [vmem:[%s2673_s13 + $0x38] sm:$0xff] %vm1621_vm0, %v1612_v47  ;;  %v1610_v27 = vmax.f32 %v1562_v24, 0.0  ;;  %v1583_v28 = vadd.f32 %v1992_v26, %v2667_v57 }
 0x462   : > { %v1574_v51 = vpop.f32.mrf.mxu0 }
 0x463   : > { %1627 = vst.msk [vmem:[%s2673_s13 + $0x28] sm:$0xff] %vm1621_vm0, %v1610_v27  ;;  %v1615_v30 = vmax.f32 %v1583_v28, 0.0  ;;  %v1575_v29 = vadd.f32 %v2667_v57, %v1574_v51 }
 0x464   : > { %v1993_v31 = vpop.f32.mrf.mxu0 }
 0x465   : > { %1632 = vst.msk [vmem:[%s2673_s13 + $0x50] sm:$0xff] %vm1621_vm0, %v1615_v30  ;;  %v1613_v35 = vmax.f32 %v1575_v29, 0.0  ;;  %v1586_v36 = vadd.f32 %v1993_v31, %v2667_v57 }
 0x466   : > { %v1577_v38 = vpop.f32.mrf.mxu0 }
 0x467   : > { %1630 = vst.msk [vmem:[%s2673_s13 + $0x40] sm:$0xff] %vm1621_vm0, %v1613_v35  ;;  %v1616_v39 = vmax.f32 %v1586_v36, 0.0  ;;  %v1578_v40 = vadd.f32 %v2667_v57, %v1577_v38 }
 0x468   : > { %v1996_v14 = vpop.f32.mrf.mxu0 }
 0x469   : > { %1633 = vst.msk [vmem:[%s2673_s13 + $0x58] sm:$0xff] %vm1621_vm0, %v1616_v39  ;;  %v1614_v37 = vmax.f32 %v1578_v40, 0.0  ;;  %v1599_v25 = vadd.f32 %v1996_v14, %v2667_v57 }
 0x46a   : > { %v1590_v41 = vpop.f32.mrf.mxu0 }
 0x46b   : > { %1631 = vst.msk [vmem:[%s2673_s13 + $0x48] sm:$0xff] %vm1621_vm0, %v1614_v37  ;;  %v1619_v42 = vmax.f32 %v1599_v25, 0.0  ;;  %v1591_v43 = vadd.f32 %v2667_v57, %v1590_v41 }
 0x46c   : > { %v1997_v44 = vpop.f32.mrf.mxu0 }
 0x46d   : > { %1636 = vst.msk [vmem:[%s2673_s13 + $0x70] sm:$0xff] %vm1621_vm0, %v1619_v42  ;;  %v1617_v45 = vmax.f32 %v1591_v43, 0.0  ;;  %v1602_v48 = vadd.f32 %v1997_v44, %v2667_v57 }
 0x46e   : > { %v1593_v49 = vpop.f32.mrf.mxu0 }
 0x46f   : > { %1634 = vst.msk [vmem:[%s2673_s13 + $0x60] sm:$0xff] %vm1621_vm0, %v1617_v45  ;;  %v1620_v32 = vmax.f32 %v1602_v48, 0.0  ;;  %v1594_v33 = vadd.f32 %v2667_v57, %v1593_v49 }
 0x471   : > { %1637 = vst.msk [vmem:[%s2673_s13 + $0x78] sm:$0xff] %vm1621_vm0, %v1620_v32  ;;  %v1618_v34 = vmax.f32 %v1594_v33, 0.0 }
 0x473   : > { %1635 = vst.msk [vmem:[%s2673_s13 + $0x68] sm:$0xff] %vm1621_vm0, %v1618_v34 }
 0x474   : > { %2104 = shalt.err (!%p2101_p13)
}
 0x475   : > { %s2105_s12 = scalar_lea.hbm %s2723_s25, 2048  ;;  %s2109_s13 = scalar_lea.hbm %s2796_s11, 8192 }
 0x476   : > { %p2106_p0 = scmp.ne.s32.totalorder %s2723_s25, %s2105_s12  ;;  %p2110_p4 = scmp.lt.s32.totalorder %s2723_s25, %s2796_s11 }
 0x477   : > { %p2111_p5 = scmp.lt.s32.totalorder %s2109_s13, %s2105_s12 }
 0x478   : > { %p2107_p1 = pnand %p2106_p0, %p2300_p3 }
 0x479   : > { %p2112_p6 = por %p2111_p5, %p2110_p4 }
 0x47a   : > { %p2108_p2 = pneg %p2107_p1 }
 0x47c   : > { %p2113_p7 = pnand %p2112_p6, %p2108_p2 }
 0x47e   : > { %2116 = shalt.err (!%p2113_p7)
}
 0x47f   : > { %s2188_s15 = smov 128  }
 0x480   : > { %2002 = dma.vmem_to_hbm [thread:$0]  (%p2300_p3), %s2727_s21, 2048, %s2723_s25, %s2733_s17, %s2188_s15, %s2188_s15, %s2185_s27  }
 0x481 PF: > { %s2823_s20 = sld [smem:[#allocation9_spill]] }
 0x482   : > { %s2824_s3 = sld [smem:[#allocation5_spill]] }
 0x487   : > { %p2008_p9 = scmp.ge.s32.totalorder %s2823_s20, 2 }
 0x488   : > { %s1670_s19 = sand.u32 1, %s2824_s3  }
 0x489   : > { %p2005_p10 = pnand %p2008_p9, %p2309_p8  ;;  %s1671_s24 = scalar_lea.sflag [#allocation3], %s1670_s19 }
 0x48b   : > { %p2006_p11 = pneg %p2005_p10 }
 0x48d   : > { %2150 = dma.done.wait (%p2006_p11), %s1671_s24, 2048  }
 0x48e   : > { %2152 = vsyncadd (%p2006_p11), %s1671_s24, 4294965248  ;;  %s24_s24 = sadd.s32 1, %s2823_s20   ;;  %s2826_s30 = sld [smem:[#allocation6_spill]] }
 0x48f   : > { %p21_p12 = scmp.ge.s32.totalorder %s24_s24, 6   ;;  %s2827_s19 = sld [smem:[#allocation13_spill]] }
 0x490   : > { %s2828_s20 = sld [smem:[#allocation7_spill]]  ;;  %s2832_s17 = smov %s2159_s18 }
 0x491   : > { %s2829_s21 = sld [smem:[#allocation8_spill]]  ;;  %23 = sbr.rel (!%p21_p12) target bundleno = 7 (0x7), region = 105 }
 0x492   : > { %s2830_s22 = sld [smem:[#allocation10_spill]] }
 0x493   : > { %s2831_s23 = sld [smem:[#allocation11_spill]] }
 0x494   : > { %s2833_s18 = smov %s2826_s30 }
 0x496   :  { %1676 = vsyncpa [#allocation3], 1 }
 0x497   :  { %1678 = vsyncpa [#allocation3 + $0x1], 1 }

</bundles_post_ra>
